<compile_context>
chip_gen: v7x
topology: tpu7x:2x2x1
jax: 0.10.0
libtpu: 0.0.40
codegen_flags: <defaults>
</compile_context>

<pallas_src>
import functools

import jax
import jax.numpy as jnp
from jax.experimental import pallas as pl
from jax.experimental.pallas import tpu as pltpu


def _round_up(v, m):
    return (v + m - 1) // m * m


def node_model_kernel(blk_lo_ref, nblk_ref, xs_ref, ea_ref, src_ref, ub_ref,
                      w1_ref, w2_ref, b2_ref, o_ref, acc_ref, *, de):
    tN, Kp = acc_ref.shape
    tE = src_ref.shape[1]
    i = pl.program_id(0)
    k = pl.program_id(1)

    @pl.when(k == 0)
    def _init():
        # acc slab layout: [counts | agg_sum(de) | x | 0-pad].  x is preplaced
        # by the wrapper so the finalize is a single fused matmul.
        acc_ref[...] = xs_ref[...].astype(jnp.float32)

    @pl.when(k < nblk_ref[i])            # skip E-blocks with no edges for tile i
    def _accumulate():
        # Scatter-sum via one-hot matmul; one-hot built directly in (tN, tE)
        # orientation, tile offset applied to the narrow src row only.
        src_local = src_ref[...] - i * tN                          # (1, tE)
        local_ids = jax.lax.broadcasted_iota(jnp.int32, (tN, tE), 0)
        onehot = (local_ids == src_local).astype(ea_ref.dtype)     # (tN, tE)
        # edge slab = [ones | edge_attr | 0]  ->  acc += [counts | sums | 0]
        acc_ref[...] += jnp.dot(onehot, ea_ref[...],
                                preferred_element_type=jnp.float32)

    @pl.when(k == pl.num_programs(1) - 1)
    def _finalize():
        acc = acc_ref[...]                                          # (tN, Kp) f32
        counts = acc[:, 0:1]
        inv = pl.reciprocal(jnp.maximum(counts, 1.0), approx=False)
        # Scale only the aggregation columns [1, de]; x / counts / pad keep 1.0.
        col = jax.lax.broadcasted_iota(jnp.int32, (1, Kp), 1)
        is_agg = jnp.logical_and(col >= 1, col <= de)
        scale = jnp.where(is_agg, inv, jnp.float32(1.0))            # (tN, Kp)
        slab = (acc * scale).astype(w1_ref.dtype)
        # Fused Linear1 over [counts | agg | x] + precomputed (u@W1u + b1),
        # ReLU, Linear2.  All matmul K dims are >= 128 (lane-dense output).
        h = jnp.dot(slab, w1_ref[...], preferred_element_type=jnp.float32)
        h = jnp.maximum(h + ub_ref[...], 0.0).astype(w2_ref.dtype)
        o_ref[...] = (jnp.dot(h, w2_ref[...], preferred_element_type=jnp.float32)
                      + b2_ref[...]).astype(o_ref.dtype)


def node_model_forward(x, edge_src, edge_attr, batch, u, W1, b1, W2, b2,
                       *, tile_n=1024, tile_e=2048, edge_compute_dtype=None,
                       vmem_budget_bytes=40 * 1024 * 1024):
    N, Dx = x.shape
    E, De = edge_attr.shape
    B, _G = u.shape
    H = W1.shape[1]
    Dout = W2.shape[1]
    cdtype = x.dtype
    edtype = jnp.dtype(edge_compute_dtype) if edge_compute_dtype else jnp.dtype(cdtype)

    Hp = _round_up(H, 128)
    Dop = _round_up(Dout, 128)
    Kp = _round_up(1 + De + Dx, 128)          # slab: [counts | agg | x | pad]
    csz = jnp.dtype(cdtype).itemsize
    esz = edtype.itemsize

    # ---- tile selection: big tiles, capped so everything (incl. the one-hot
    # matmul operand) fits under ~40 MiB -> safe on v7x's 64 MiB VMEM. ----
    tN = min(tile_n, _round_up(N, 8))
    tE = min(tile_e, _round_up(max(E, 1), 128))

    def vmem_estimate(tn, te):
        return (tn * te * (esz + 4)              # one-hot operand + int temps
                + 2 * te * (Kp * esz + 4)        # edge slab + src row (2 bufs)
                + 2 * tn * Kp * csz              # x slab
                + 2 * tn * Hp * 4                # u@W1u + b1 table
                + 2 * tn * Dop * csz             # output block
                + tn * Kp * 4                    # accumulator scratch
                + 2 * (Kp * Hp + Hp * Dop + Dop) * csz)   # weights / bias

    while vmem_estimate(tN, tE) > vmem_budget_bytes and tE > 512:
        tE = max(512, _round_up(tE // 2, 128))
    while vmem_estimate(tN, tE) > vmem_budget_bytes and tN > 256:
        tN = max(256, _round_up(tN // 2, 8))

    Np = _round_up(N, tN)
    Ep = _round_up(max(E, 1), tE)
    num_nb = Np // tN
    num_eb = Ep // tE

    # ---- split W1 by the concat order [x, agg, u] ----
    W1x = W1[:Dx]
    W1e = W1[Dx:Dx + De]
    W1u = W1[Dx + De:]

    # u @ W1u + b1, gathered per node (B is tiny -> do it in the wrapper).
    ub = (u.astype(jnp.float32) @ W1u.astype(jnp.float32)
          + b1.astype(jnp.float32)[None, :])[batch]                 # (N, H) f32
    ub_p = jnp.pad(ub, ((0, Np - N), (0, Hp - H)))

    # x preplaced in its slab columns [1+De, 1+De+Dx).
    x_slab = jnp.pad(x.astype(cdtype),
                     ((0, Np - N), (1 + De, Kp - (1 + De + Dx))))

    # Edges sorted by src so each N-tile's edges occupy a contiguous E range.
    order = jnp.argsort(edge_src)
    src_sorted = edge_src[order].astype(jnp.int32)
    ea_sorted = edge_attr[order].astype(edtype)
    ea1 = jnp.concatenate([jnp.ones((E, 1), edtype), ea_sorted], axis=1)
    ea_p = jnp.pad(ea1, ((0, Ep - E), (0, Kp - (1 + De))))
    # Padded edges carry src = Np (sentinel >= N) so they never match a node.
    src_p = jnp.concatenate(
        [src_sorted, jnp.full((Ep - E,), Np, jnp.int32)]).reshape(1, Ep)

    # Per-N-tile E-block range table (scalar-prefetched into SMEM).
    tile_lo = jnp.arange(num_nb, dtype=jnp.int32) * tN
    lo = jnp.searchsorted(src_p[0], tile_lo).astype(jnp.int32)
    hi = jnp.searchsorted(src_p[0], tile_lo + tN).astype(jnp.int32)
    blk_lo = jnp.minimum(lo // tE, num_eb - 1).astype(jnp.int32)
    nblk = jnp.where(hi > lo, (hi - 1) // tE - lo // tE + 1, 0).astype(jnp.int32)

    # Stacked Linear1 weight matching the slab: [0(counts) ; W1e ; W1x ; 0-pad].
    W1stk = jnp.concatenate([jnp.zeros((1, H), W1.dtype), W1e, W1x], axis=0)
    W1stk_p = jnp.pad(W1stk.astype(cdtype),
                      ((0, Kp - (1 + De + Dx)), (0, Hp - H)))
    W2_p = jnp.pad(W2.astype(cdtype), ((0, Hp - H), (0, Dop - Dout)))
    b2_p = jnp.pad(b2.astype(jnp.float32).reshape(1, Dout),
                   ((0, 0), (0, Dop - Dout)))

    def e_block(i, k, blo, nbl):
        # Clamp inactive steps to the last active block -> no redundant DMA.
        return blo[i] + jnp.minimum(k, jnp.maximum(nbl[i] - 1, 0))

    cost = pl.CostEstimate(
        flops=2 * (Np * Ep * Kp + Np * Kp * Hp + Np * Hp * Dop),
        transcendentals=Np,
        bytes_accessed=(Np * Kp * csz + Ep * (Kp * esz + 4) + Np * Hp * 4
                        + (Kp * Hp + Hp * Dop + Dop) * csz + Np * Dop * csz),
    )

    out = pl.pallas_call(
        functools.partial(node_model_kernel, de=De),
        out_shape=jax.ShapeDtypeStruct((Np, Dop), cdtype),
        grid_spec=pltpu.PrefetchScalarGridSpec(
            num_scalar_prefetch=2,
            grid=(num_nb, num_eb),
            in_specs=[
                pl.BlockSpec((tN, Kp), lambda i, k, blo, nbl: (i, 0)),   # x slab
                pl.BlockSpec((tE, Kp),
                             lambda i, k, blo, nbl: (e_block(i, k, blo, nbl), 0)),
                pl.BlockSpec((1, tE),
                             lambda i, k, blo, nbl: (0, e_block(i, k, blo, nbl))),
                pl.BlockSpec((tN, Hp), lambda i, k, blo, nbl: (i, 0)),   # u@W1u+b1
                pl.BlockSpec((Kp, Hp), lambda i, k, blo, nbl: (0, 0)),   # W1 stacked
                pl.BlockSpec((Hp, Dop), lambda i, k, blo, nbl: (0, 0)),  # W2
                pl.BlockSpec((1, Dop), lambda i, k, blo, nbl: (0, 0)),   # b2
            ],
            out_specs=pl.BlockSpec((tN, Dop), lambda i, k, blo, nbl: (i, 0)),
            scratch_shapes=[pltpu.VMEM((tN, Kp), jnp.float32)],
        ),
        compiler_params=pltpu.CompilerParams(
            dimension_semantics=("parallel", "arbitrary"),
            vmem_limit_bytes=48 * 1024 * 1024,
        ),
        cost_estimate=cost,
    )(blk_lo, nblk, x_slab, ea_p, src_p, ub_p, W1stk_p, W2_p, b2_p)

    return out[:N, :Dout]


def reference_forward(x, edge_src, edge_attr, batch, u, W1, b1, W2, b2):
    N = x.shape[0]
    seg_sum = jax.ops.segment_sum(edge_attr, edge_src, num_segments=N)
    seg_cnt = jax.ops.segment_sum(jnp.ones((edge_attr.shape[0],)), edge_src,
                                  num_segments=N)
    agg = seg_sum / jnp.maximum(seg_cnt, 1.0)[:, None]
    u_exp = u[batch]
    combined = jnp.concatenate([x, agg, u_exp], axis=1)
    h = jnp.maximum(combined @ W1 + b1, 0.0)
    return h @ W2 + b2


if __name__ == "__main__":
    # ---- small forward-consistent shapes ----
    N, E, B = 16, 32, 2                      # nodes, edges, graphs
    node_in_dim, edge_out_dim, global_in_dim = 8, 8, 4
    node_out_dim, hidden_dim = 8, 32

    key = jax.random.PRNGKey(0)
    k = jax.random.split(key, 12)
    x = jax.random.normal(k[0], (N, node_in_dim), jnp.float32)
    edge_attr = jax.random.normal(k[1], (E, edge_out_dim), jnp.float32)
    edge_src = jax.random.randint(k[2], (E,), 0, N, jnp.int32)
    batch = jnp.concatenate([jnp.zeros(N // 2, jnp.int32),
                             jnp.ones(N - N // 2, jnp.int32)])
    u = jax.random.normal(k[3], (B, global_in_dim), jnp.float32)

    Din = node_in_dim + edge_out_dim + global_in_dim
    W1 = jax.random.normal(k[4], (Din, hidden_dim), jnp.float32) * 0.1
    b1 = jax.random.normal(k[5], (hidden_dim,), jnp.float32) * 0.1
    W2 = jax.random.normal(k[6], (hidden_dim, node_out_dim), jnp.float32) * 0.1
    b2 = jax.random.normal(k[7], (node_out_dim,), jnp.float32) * 0.1

    out = node_model_forward(x, edge_src, edge_attr, batch, u, W1, b1, W2, b2)
    out = jax.block_until_ready(out)
    ref = reference_forward(x, edge_src, edge_attr, batch, u, W1, b1, W2, b2)
    assert out.shape == (N, node_out_dim)
    assert jnp.allclose(out, ref, atol=2e-3, rtol=2e-3)

    # ---- larger multi-tile case exercising E-block skipping / clamping ----
    N2, E2, B2 = 512, 2048, 4
    x2 = jax.random.normal(k[8], (N2, node_in_dim), jnp.float32)
    ea2 = jax.random.normal(k[9], (E2, edge_out_dim), jnp.float32)
    src2 = jax.random.randint(k[10], (E2,), 0, N2, jnp.int32)
    batch2 = jnp.repeat(jnp.arange(B2, dtype=jnp.int32), N2 // B2)
    u2 = jax.random.normal(k[11], (B2, global_in_dim), jnp.float32)

    out2 = node_model_forward(x2, src2, ea2, batch2, u2, W1, b1, W2, b2,
                              tile_n=128, tile_e=256)
    out2 = jax.block_until_ready(out2)
    ref2 = reference_forward(x2, src2, ea2, batch2, u2, W1, b1, W2, b2)
    assert out2.shape == (N2, node_out_dim)
    assert jnp.allclose(out2, ref2, atol=2e-3, rtol=2e-3)

    print("KERNEL_OK")
</pallas_src>

<mosaic_0001>
module attributes {stable_mosaic.version = 11 : i64} {
  func.func @node_model_kernel(%arg0: i32, %arg1: i32, %arg2: memref<1xi32, #tpu.memory_space<smem>>, %arg3: memref<1xi32, #tpu.memory_space<smem>>, %arg4: memref<16x128xf32, #tpu.memory_space<vmem>>, %arg5: memref<128x128xf32, #tpu.memory_space<vmem>>, %arg6: memref<1x128xi32, #tpu.memory_space<vmem>>, %arg7: memref<16x128xf32, #tpu.memory_space<vmem>>, %arg8: memref<128x128xf32, #tpu.memory_space<vmem>>, %arg9: memref<128x128xf32, #tpu.memory_space<vmem>>, %arg10: memref<1x128xf32, #tpu.memory_space<vmem>>, %arg11: memref<16x128xf32, #tpu.memory_space<vmem>>, %arg12: memref<16x128xf32, #tpu.memory_space<vmem>>) attributes {dimension_semantics = [#tpu.dimension_semantics<parallel>, #tpu.dimension_semantics<arbitrary>], iteration_bounds = array<i64: 1, 1>, scalar_prefetch = 2 : i64, scratch_operands = 1 : i64, tpu.core_type = #tpu.core_type<tc>, window_params = [{transform_indices = @transform_0, window_bounds = array<i64: 16, 128>}, {transform_indices = @transform_1, window_bounds = array<i64: 128, 128>}, {transform_indices = @transform_2, window_bounds = array<i64: 1, 128>}, {transform_indices = @transform_3, window_bounds = array<i64: 16, 128>}, {pipeline_mode = #tpu.pipeline_mode<synchronous>, transform_indices = @transform_4, window_bounds = array<i64: 128, 128>}, {pipeline_mode = #tpu.pipeline_mode<synchronous>, transform_indices = @transform_5, window_bounds = array<i64: 128, 128>}, {pipeline_mode = #tpu.pipeline_mode<synchronous>, transform_indices = @transform_6, window_bounds = array<i64: 1, 128>}, {transform_indices = @transform_7, window_bounds = array<i64: 16, 128>}]} {
    %c0_i32 = arith.constant 0 : i32
    %0 = arith.cmpi eq, %arg1, %c0_i32 : i32
    %1 = arith.extui %0 : i1 to i32
    %c0_i32_0 = arith.constant 0 : i32
    %2 = arith.cmpi ne, %1, %c0_i32_0 : i32
    scf.if %2 {
      %c0 = arith.constant 0 : index
      %c0_4 = arith.constant 0 : index
      %11 = vector.load %arg4[%c0, %c0_4] : memref<16x128xf32, #tpu.memory_space<vmem>>, vector<16x128xf32>
      %c0_5 = arith.constant 0 : index
      %c0_6 = arith.constant 0 : index
      %12 = vector.load %arg12[%c0_5, %c0_6] : memref<16x128xf32, #tpu.memory_space<vmem>>, vector<16x128xf32>
      tpu.vector_store %arg12[%c0_5, %c0_6], %11 {strides = array<i32>} : memref<16x128xf32, #tpu.memory_space<vmem>>, vector<16x128xf32>,
    } else {
    }
    %3 = arith.index_cast %arg0 : i32 to index
    %4 = memref.load %arg3[%3] : memref<1xi32, #tpu.memory_space<smem>>
    %5 = arith.cmpi slt, %arg1, %4 : i32
    %6 = arith.extui %5 : i1 to i32
    %c0_i32_1 = arith.constant 0 : i32
    %7 = arith.cmpi ne, %6, %c0_i32_1 : i32
    scf.if %7 {
      %c0 = arith.constant 0 : index
      %c0_4 = arith.constant 0 : index
      %11 = vector.load %arg6[%c0, %c0_4] : memref<1x128xi32, #tpu.memory_space<vmem>>, vector<1x128xi32>
      %c16_i32 = arith.constant 16 : i32
      %12 = arith.muli %arg0, %c16_i32 : i32
      %13 = vector.broadcast %12 : i32 to vector<1x128xi32>
      %14 = arith.subi %11, %13 : vector<1x128xi32>
      %15 = tpu.iota {dimensions = array<i32: 0>} : vector<16x128xi32>
      %16 = vector.broadcast %14 : vector<1x128xi32> to vector<16x128xi32>
      %17 = arith.cmpi eq, %15, %16 : vector<16x128xi32>
      %18 = arith.extui %17 : vector<16x128xi1> to vector<16x128xi32>
      %19 = arith.sitofp %18 : vector<16x128xi32> to vector<16x128xf32>
      %c0_5 = arith.constant 0 : index
      %c0_6 = arith.constant 0 : index
      %20 = vector.load %arg12[%c0_5, %c0_6] : memref<16x128xf32, #tpu.memory_space<vmem>>, vector<16x128xf32>
      %c0_7 = arith.constant 0 : index
      %c0_8 = arith.constant 0 : index
      %21 = vector.load %arg5[%c0_7, %c0_8] : memref<128x128xf32, #tpu.memory_space<vmem>>, vector<128x128xf32>
      %cst = arith.constant dense<0.000000e+00> : vector<16x128xf32>
      %22 = tpu.matmul %19, %21, %cst {dimension_numbers = #tpu.dot_dimension_numbers<[1], [0], [0], [1], [0, 0, 1, 1], [], []>} : vector<16x128xf32>, vector<128x128xf32>, vector<16x128xf32> -> vector<16x128xf32>
      %23 = arith.addf %20, %22 : vector<16x128xf32>
      %c0_9 = arith.constant 0 : index
      %c0_10 = arith.constant 0 : index
      %24 = vector.load %arg12[%c0_9, %c0_10] : memref<16x128xf32, #tpu.memory_space<vmem>>, vector<16x128xf32>
      tpu.vector_store %arg12[%c0_9, %c0_10], %23 {strides = array<i32>} : memref<16x128xf32, #tpu.memory_space<vmem>>, vector<16x128xf32>,
    } else {
    }
    %c0_i32_2 = arith.constant 0 : i32
    %8 = arith.cmpi eq, %arg1, %c0_i32_2 : i32
    %9 = arith.extui %8 : i1 to i32
    %c0_i32_3 = arith.constant 0 : i32
    %10 = arith.cmpi ne, %9, %c0_i32_3 : i32
    scf.if %10 {
      %c0 = arith.constant 0 : index
      %c0_4 = arith.constant 0 : index
      %11 = vector.load %arg12[%c0, %c0_4] : memref<16x128xf32, #tpu.memory_space<vmem>>, vector<16x128xf32>
      %12 = vector.extract_strided_slice %11 {offsets = [0, 0], sizes = [16, 1], strides = [1, 1]} : vector<16x128xf32> to vector<16x1xf32>
      %cst = arith.constant 1.000000e+00 : f32
      %13 = vector.broadcast %cst : f32 to vector<16x1xf32>
      %14 = arith.maximumf %12, %13 : vector<16x1xf32>
      %15 = tpu.reciprocal %14 : vector<16x1xf32> -> vector<16x1xf32>
      %16 = tpu.iota {dimensions = array<i32: 1>} : vector<1x128xi32>
      %c1_i32 = arith.constant 1 : i32
      %17 = vector.broadcast %c1_i32 : i32 to vector<1x128xi32>
      %18 = arith.cmpi sge, %16, %17 : vector<1x128xi32>
      %c8_i32 = arith.constant 8 : i32
      %19 = vector.broadcast %c8_i32 : i32 to vector<1x128xi32>
      %20 = arith.cmpi sle, %16, %19 : vector<1x128xi32>
      %21 = arith.andi %18, %20 : vector<1x128xi1>
      %cst_5 = arith.constant 1.000000e+00 : f32
      %22 = vector.shape_cast %21 : vector<1x128xi1> to vector<1x128xi1>
      %23 = vector.broadcast %22 : vector<1x128xi1> to vector<16x128xi1>
      %24 = vector.shape_cast %15 : vector<16x1xf32> to vector<16x1xf32>
      %25 = vector.broadcast %24 : vector<16x1xf32> to vector<16x128xf32>
      %26 = vector.broadcast %cst_5 : f32 to vector<16x128xf32>
      %27 = arith.select %23, %25, %26 : vector<16x128xi1>, vector<16x128xf32>
      %28 = arith.mulf %11, %27 : vector<16x128xf32>
      %c0_6 = arith.constant 0 : index
      %c0_7 = arith.constant 0 : index
      %29 = vector.load %arg8[%c0_6, %c0_7] : memref<128x128xf32, #tpu.memory_space<vmem>>, vector<128x128xf32>
      %cst_8 = arith.constant dense<0.000000e+00> : vector<16x128xf32>
      %30 = tpu.matmul %28, %29, %cst_8 {dimension_numbers = #tpu.dot_dimension_numbers<[1], [0], [0], [1], [0, 0, 1, 1], [], []>} : vector<16x128xf32>, vector<128x128xf32>, vector<16x128xf32> -> vector<16x128xf32>
      %c0_9 = arith.constant 0 : index
      %c0_10 = arith.constant 0 : index
      %31 = vector.load %arg7[%c0_9, %c0_10] : memref<16x128xf32, #tpu.memory_space<vmem>>, vector<16x128xf32>
      %32 = arith.addf %30, %31 : vector<16x128xf32>
      %cst_11 = arith.constant 0.000000e+00 : f32
      %33 = vector.broadcast %cst_11 : f32 to vector<16x128xf32>
      %34 = arith.maximumf %32, %33 : vector<16x128xf32>
      %c0_12 = arith.constant 0 : index
      %c0_13 = arith.constant 0 : index
      %35 = vector.load %arg9[%c0_12, %c0_13] : memref<128x128xf32, #tpu.memory_space<vmem>>, vector<128x128xf32>
      %cst_14 = arith.constant dense<0.000000e+00> : vector<16x128xf32>
      %36 = tpu.matmul %34, %35, %cst_14 {dimension_numbers = #tpu.dot_dimension_numbers<[1], [0], [0], [1], [0, 0, 1, 1], [], []>} : vector<16x128xf32>, vector<128x128xf32>, vector<16x128xf32> -> vector<16x128xf32>
      %c0_15 = arith.constant 0 : index
      %c0_16 = arith.constant 0 : index
      %37 = vector.load %arg10[%c0_15, %c0_16] : memref<1x128xf32, #tpu.memory_space<vmem>>, vector<1x128xf32>
      %38 = vector.broadcast %37 : vector<1x128xf32> to vector<16x128xf32>
      %39 = arith.addf %36, %38 : vector<16x128xf32>
      %c0_17 = arith.constant 0 : index
      %c0_18 = arith.constant 0 : index
      %40 = vector.load %arg11[%c0_17, %c0_18] : memref<16x128xf32, #tpu.memory_space<vmem>>, vector<16x128xf32>
      tpu.vector_store %arg11[%c0_17, %c0_18], %39 {strides = array<i32>} : memref<16x128xf32, #tpu.memory_space<vmem>>, vector<16x128xf32>,
    } else {
    }
    return
  }
  func.func @transform_0(%arg0: i32, %arg1: i32, %arg2: memref<1xi32, #tpu.memory_space<smem>>, %arg3: memref<1xi32, #tpu.memory_space<smem>>) -> (i32, i32) {
    %c0_i32 = arith.constant 0 : i32
    %c0_i32_0 = arith.constant 0 : i32
    return %arg0, %c0_i32 : i32, i32
  }
  func.func @transform_1(%arg0: i32, %arg1: i32, %arg2: memref<1xi32, #tpu.memory_space<smem>>, %arg3: memref<1xi32, #tpu.memory_space<smem>>) -> (i32, i32) {
    %0 = arith.index_cast %arg0 : i32 to index
    %1 = memref.load %arg2[%0] : memref<1xi32, #tpu.memory_space<smem>>
    %2 = arith.index_cast %arg0 : i32 to index
    %3 = memref.load %arg3[%2] : memref<1xi32, #tpu.memory_space<smem>>
    %c1_i32 = arith.constant 1 : i32
    %4 = arith.subi %3, %c1_i32 : i32
    %c0_i32 = arith.constant 0 : i32
    %5 = arith.maxsi %4, %c0_i32 : i32
    %6 = arith.minsi %arg1, %5 : i32
    %7 = arith.addi %1, %6 : i32
    %c0_i32_0 = arith.constant 0 : i32
    %c0_i32_1 = arith.constant 0 : i32
    return %7, %c0_i32_0 : i32, i32
  }
  func.func @transform_2(%arg0: i32, %arg1: i32, %arg2: memref<1xi32, #tpu.memory_space<smem>>, %arg3: memref<1xi32, #tpu.memory_space<smem>>) -> (i32, i32) {
    %0 = arith.index_cast %arg0 : i32 to index
    %1 = memref.load %arg2[%0] : memref<1xi32, #tpu.memory_space<smem>>
    %2 = arith.index_cast %arg0 : i32 to index
    %3 = memref.load %arg3[%2] : memref<1xi32, #tpu.memory_space<smem>>
    %c1_i32 = arith.constant 1 : i32
    %4 = arith.subi %3, %c1_i32 : i32
    %c0_i32 = arith.constant 0 : i32
    %5 = arith.maxsi %4, %c0_i32 : i32
    %6 = arith.minsi %arg1, %5 : i32
    %7 = arith.addi %1, %6 : i32
    %c0_i32_0 = arith.constant 0 : i32
    %c0_i32_1 = arith.constant 0 : i32
    return %c0_i32_0, %7 : i32, i32
  }
  func.func @transform_3(%arg0: i32, %arg1: i32, %arg2: memref<1xi32, #tpu.memory_space<smem>>, %arg3: memref<1xi32, #tpu.memory_space<smem>>) -> (i32, i32) {
    %c0_i32 = arith.constant 0 : i32
    %c0_i32_0 = arith.constant 0 : i32
    return %arg0, %c0_i32 : i32, i32
  }
  func.func @transform_4(%arg0: i32, %arg1: i32, %arg2: memref<1xi32, #tpu.memory_space<smem>>, %arg3: memref<1xi32, #tpu.memory_space<smem>>) -> (i32, i32) {
    %c0_i32 = arith.constant 0 : i32
    %c0_i32_0 = arith.constant 0 : i32
    %c0_i32_1 = arith.constant 0 : i32
    return %c0_i32, %c0_i32_0 : i32, i32
  }
  func.func @transform_5(%arg0: i32, %arg1: i32, %arg2: memref<1xi32, #tpu.memory_space<smem>>, %arg3: memref<1xi32, #tpu.memory_space<smem>>) -> (i32, i32) {
    %c0_i32 = arith.constant 0 : i32
    %c0_i32_0 = arith.constant 0 : i32
    %c0_i32_1 = arith.constant 0 : i32
    return %c0_i32, %c0_i32_0 : i32, i32
  }
  func.func @transform_6(%arg0: i32, %arg1: i32, %arg2: memref<1xi32, #tpu.memory_space<smem>>, %arg3: memref<1xi32, #tpu.memory_space<smem>>) -> (i32, i32) {
    %c0_i32 = arith.constant 0 : i32
    %c0_i32_0 = arith.constant 0 : i32
    %c0_i32_1 = arith.constant 0 : i32
    return %c0_i32, %c0_i32_0 : i32, i32
  }
  func.func @transform_7(%arg0: i32, %arg1: i32, %arg2: memref<1xi32, #tpu.memory_space<smem>>, %arg3: memref<1xi32, #tpu.memory_space<smem>>) -> (i32, i32) {
    %c0_i32 = arith.constant 0 : i32
    %c0_i32_0 = arith.constant 0 : i32
    return %arg0, %c0_i32 : i32, i32
  }
}

</mosaic_0001>

<bundles_post_ra>
// kernel: tpu_custom_call.1
= control target key start
LH: loop header
LB: loop body
LE: loop exit
PB: predicated region body
PF: predicated region fallthrough
CT: control target
= control target key end

     0   :  { %16 = vsyncpa [#allocation7], 0  ;;  %s1131_s0 = inlined_call_operand.<no memory space> [shape: s32[1], index: 0, kind: input, shape index: {}]   ;;  %s1132_s1 = inlined_call_operand.<no memory space> [shape: s32[1], index: 1, kind: input, shape index: {}]   ;;  %s1133_s2 = inlined_call_operand.hbm [shape: f32[16,128], index: 2, kind: input, shape index: {}]   ;;  %s1134_s3 = inlined_call_operand.hbm [shape: f32[128,128], index: 3, kind: input, shape index: {}]   ;;  %s1135_s4 = inlined_call_operand.vmem [shape: s32[1,128], index: 4, kind: input, shape index: {}]   ;;  %s1136_s5 = inlined_call_operand.vmem [shape: f32[16,128], index: 5, kind: input, shape index: {}]   ;;  %s1137_s6 = inlined_call_operand.hbm [shape: f32[128,128], index: 6, kind: input, shape index: {}]   ;;  %s1138_s7 = inlined_call_operand.hbm [shape: f32[128,128], index: 7, kind: input, shape index: {}]   ;;  %s1139_s8 = inlined_call_operand.vmem [shape: f32[1,128], index: 8, kind: input, shape index: {}]   ;;  %s1140_s9 = inlined_call_operand.hbm [shape: f32[16,128], index: 9, kind: output, shape index: {}]  }
   0x1   :  { %17 = vsyncpa [#allocation10], 0 }
   0x2   :  { %18 = vsyncpa [#allocation13], 0 }
   0x3   :  { %19 = vsyncpa [#allocation8], 0  ;;  %s532_s11 = sadd.s32 4294967295, %s1132_s1  ;;  %s942_s12 = smov [#allocation9]  }
   0x4   :  { %p37_p0 = scmp.gt.s32.totalorder %s532_s11, 0  ;;  %s48_s13 = sshll.u32 %s942_s12, 4  ;;  %s1004_s13 = int_to_ptr.vmem [resolvable:$true] %s48_s13 }
   0x5   :  { %s943_s14 = smov [#allocation6]   ;;  %s944_s16 = smov [#allocation11]  }
   0x6   :  { %s1142_s11 = smov (!%p37_p0, %s532_s11), 0  ;;  %s25_s15 = sshll.u32 %s943_s14, 4  ;;  %s1006_s15 = int_to_ptr.vmem [resolvable:$true] %s25_s15 }
   0x7   :  { %s1144_s11 = smov (%p37_p0, %s1142_s11), 0  ;;  %s83_s17 = sshll.u32 %s944_s16, 4  ;;  %s1013_s17 = int_to_ptr.vmem [resolvable:$true] %s83_s17 }
   0x8   :  { %s1011_s20 = sadd.s32 %s1144_s11, %s1131_s0  ;;  %s945_s25 = smov [#allocation12]  }
   0x9   :  { %s549_s21 = sshll.u32 %s1011_s20, 11  ;;  %s1019_s26 = sshll.u32 %s945_s25, 4  ;;  %s96_s26 = int_to_ptr.vmem [resolvable:$true] %s1019_s26 }
   0xa   :  { %s47_s24 = scalar_lea.hbm %s1134_s3, %s549_s21  ;;  %s824_s30 = scalar_lea.hbm %s1134_s3, 2048 }
   0xb   :  { %s822_s27 = scalar_lea.hbm %s47_s24, 2048  ;;  %p825_p2 = scmp.lt.u32.totalorder %s47_s24, %s1134_s3 }
   0xc   :  { %p823_p1 = scmp.ne.s32.totalorder %s47_s24, %s822_s27  ;;  %p826_p3 = scmp.lt.u32.totalorder %s824_s30, %s822_s27 }
   0xd   :  { %p828_p5 = scmp.lt.u32.totalorder %s822_s27, %s47_s24 }
   0xe   :  { %p827_p4 = por %p826_p3, %p825_p2 }
  0x10   :  { %p829_p6 = por %p828_p5, %p827_p4 }
  0x12   :  { %p830_p7 = pnand %p829_p6, %p823_p1 }
  0x14   :  { %833 = shalt.err (!%p830_p7)
}
  0x15   :  { %s834_s11 = scalar_lea.vmem %s1004_s13, 2048  ;;  %p839_p9 = scmp.lt.s32.totalorder %s1004_s13, %s1004_s13 }
  0x16   :  { %p835_p8 = scmp.ne.s32.totalorder %s1004_s13, %s834_s11  ;;  %p840_p10 = scmp.lt.s32.totalorder %s834_s11, %s834_s11 }
  0x18   :  { %p841_p11 = por %p840_p10, %p839_p9 }
  0x1a   :  { %p842_p12 = pnand %p841_p11, %p835_p8 }
  0x1c   :  { %845 = shalt.err (!%p842_p12)
}
  0x1d   :  { %s946_s12 = smov 128   ;;  %s947_s3 = smov 8  }
  0x1e   :  { %54 = dma.hbm_to_vmem [thread:$0]  %s47_s24, 2048, %s1004_s13, [#allocation10], %s946_s12, %s946_s12, %s947_s3  }
  0x1f   :  { %s846_s18 = scalar_lea.hbm %s1133_s2, 256 }
  0x20   :  { %p847_p13 = scmp.ne.s32.totalorder %s1133_s2, %s846_s18  ;;  %p850_p0 = scmp.lt.u32.totalorder %s846_s18, %s1133_s2 }
  0x22   :  { %p852_p1 = pnand %p850_p0, %p847_p13 }
  0x24   :  { %855 = shalt.err (!%p852_p1)
}
  0x25   :  { %s856_s25 = scalar_lea.vmem %s1006_s15, 256  ;;  %p861_p3 = scmp.lt.s32.totalorder %s1006_s15, %s1006_s15 }
  0x26   :  { %p857_p2 = scmp.ne.s32.totalorder %s1006_s15, %s856_s25  ;;  %p862_p4 = scmp.lt.s32.totalorder %s856_s25, %s856_s25 }
  0x28   :  { %p863_p5 = por %p862_p4, %p861_p3 }
  0x2a   :  { %p864_p6 = pnand %p863_p5, %p857_p2 }
  0x2c   :  { %867 = shalt.err (!%p864_p6)
}
  0x2d   :  { %31 = dma.hbm_to_vmem [thread:$0]  %s1133_s2, 256, %s1006_s15, [#allocation7], %s946_s12, %s946_s12, %s947_s3  }
  0x2e   :  { %s868_s29 = scalar_lea.hbm %s1137_s6, 2048 }
  0x2f   :  { %p869_p7 = scmp.ne.s32.totalorder %s1137_s6, %s868_s29  ;;  %p872_p8 = scmp.lt.u32.totalorder %s868_s29, %s1137_s6 }
  0x31   :  { %p874_p9 = pnand %p872_p8, %p869_p7 }
  0x33   :  { %877 = shalt.err (!%p874_p9)
}
  0x34   :  { %s878_s14 = scalar_lea.vmem %s1013_s17, 2048  ;;  %p883_p11 = scmp.lt.s32.totalorder %s1013_s17, %s1013_s17 }
  0x35   :  { %p879_p10 = scmp.ne.s32.totalorder %s1013_s17, %s878_s14  ;;  %p884_p12 = scmp.lt.s32.totalorder %s878_s14, %s878_s14 }
  0x37   :  { %p885_p13 = por %p884_p12, %p883_p11 }
  0x39   :  { %p886_p0 = pnand %p885_p13, %p879_p10 }
  0x3b   :  { %889 = shalt.err (!%p886_p0)
}
  0x3c   :  { %89 = dma.hbm_to_vmem [thread:$0]  %s1137_s6, 2048, %s1013_s17, [#allocation10], %s946_s12, %s946_s12, %s947_s3  }
  0x3d   :  { %s890_s19 = scalar_lea.hbm %s1138_s7, 2048 }
  0x3e   :  { %p891_p1 = scmp.ne.s32.totalorder %s1138_s7, %s890_s19  ;;  %p894_p2 = scmp.lt.u32.totalorder %s890_s19, %s1138_s7 }
  0x40   :  { %p896_p3 = pnand %p894_p2, %p891_p1 }
  0x42   :  { %899 = shalt.err (!%p896_p3)
}
  0x43   :  { %s900_s13 = scalar_lea.vmem %s96_s26, 2048  ;;  %p905_p5 = scmp.lt.s32.totalorder %s96_s26, %s96_s26 }
  0x44   :  { %p901_p4 = scmp.ne.s32.totalorder %s96_s26, %s900_s13  ;;  %p906_p6 = scmp.lt.s32.totalorder %s900_s13, %s900_s13 }
  0x46   :  { %p907_p7 = por %p906_p6, %p905_p5 }
  0x48   :  { %p908_p8 = pnand %p907_p7, %p901_p4 }
  0x4a   :  { %911 = shalt.err (!%p908_p8)
}
  0x4b   :  { %101 = dma.hbm_to_vmem [thread:$0]  %s1138_s7, 2048, %s96_s26, [#allocation13], %s946_s12, %s946_s12, %s947_s3  }
  0x4c   :  { %934 = dma.done.wait [#allocation7], 256  }
  0x4d   :  { %935 = vsyncadd [#allocation7], 4294967040 }
  0x4e   :  { %936 = dma.done.wait [#allocation10], 4096  }
  0x4f   :  { %937 = vsyncadd [#allocation10], 4294963200 }
  0x50   :  { %938 = dma.done.wait [#allocation13], 2048  }
  0x51   :  { %939 = vsyncadd [#allocation13], 4294965248  ;;  %p144_p9 = scmp.lt.s32.totalorder %s1011_s20, 0  ;;  %v159_v0 = vld [vmem:[#allocation6] sm:$0xff]  ;;  %v160_v1 = vld [vmem:[#allocation6 + $0x8] sm:$0xff]  ;;  %p539_p10 = scmp.le.s32.totalorder %s1132_s1, 0 }
  0x52   :  { %161 = vst [vmem:[#allocation2] sm:$0xff] %v159_v0  ;;  %162 = vst [vmem:[#allocation2 + $0x8] sm:$0xff] %v160_v1  ;;  %v187_v2 = vld [vmem:[#allocation9] sm:$0xff] (!%p539_p10)  ;;  %v188_v3 = vld [vmem:[#allocation9 + $0x8] sm:$0xff] (!%p539_p10)  ;;  %v172_v5 = vlaneseq (!%p539_p10)  ;;  %v948_v16 = vmov (!%p539_p10), 1.0  }
  0x53   :  { %s1146_s20 = smov (!%p144_p9, %s1011_s20), 0  ;;  %167 = sbr.rel (%p539_p10) target bundleno = 334 (0x14e), region = 53 }
  0x54   :  { %s146_s28 = scalar_lea.vmem %s1135_s4, %s1146_s20  ;;  %v189_v4 = vld [vmem:[#allocation9 + $0x10] sm:$0xff] (!%p539_p10)  ;;  %v712_v6 = vpack.c.bf16 (!%p539_p10), %v188_v3, %v187_v2  ;;  %v190_v7 = vld [vmem:[#allocation9 + $0x18] sm:$0xff] (!%p539_p10)  ;;  %v191_v9 = vld [vmem:[#allocation9 + $0x20] sm:$0xff] (!%p539_p10)  ;;  %v173_v11 = vshrl.u32 (!%p539_p10), %v172_v5, 7 }
  0x55   :  { %v716_v8 = vpack.c.bf16 (!%p539_p10), %v190_v7, %v189_v4  ;;  %v192_v10 = vld [vmem:[#allocation9 + $0x28] sm:$0xff] (!%p539_p10)  ;;  %v540_v13 = vld [vmem:[%s146_s28] ss:$0 sm:$0xff] (!%p539_p10)  ;;  %v193_v14 = vld [vmem:[#allocation9 + $0x30] sm:$0xff] (!%p539_p10) }
  0x56   :  { %713 = vmatprep.subr.bf16.mxu0 (!%p539_p10), %v712_v6  ;;  %v720_v12 = vpack.c.bf16 (!%p539_p10), %v192_v10, %v191_v9  ;;  %v194_v15 = vld [vmem:[#allocation9 + $0x38] sm:$0xff] (!%p539_p10)  ;;  %vm179_vm0 = vcmp.eq.s32.totalorder (!%p539_p10), %v173_v11, %v540_v13  ;;  %v195_v18 = vld [vmem:[#allocation9 + $0x40] sm:$0xff] (!%p539_p10)  ;;  %v196_v19 = vld [vmem:[#allocation9 + $0x48] sm:$0xff] (!%p539_p10)  ;;  %v174_v30 = vadd.s32 (!%p539_p10), 8, %v173_v11 }
  0x57   :  { %715 = vmatpush3.bf16.msra.mxu0 (!%p539_p10), %v712_v6  ;;  %639 = vmatprep.mubr.msk.f32.mxu0 (!%p539_p10), %vm179_vm0, %v948_v16  ;;  %v724_v17 = vpack.c.bf16 (!%p539_p10), %v194_v15, %v193_v14  ;;  %v728_v20 = vpack.c.bf16 (!%p539_p10), %v196_v19, %v195_v18  ;;  %v197_v21 = vld [vmem:[#allocation9 + $0x50] sm:$0xff] (!%p539_p10)  ;;  %v198_v22 = vld [vmem:[#allocation9 + $0x58] sm:$0xff] (!%p539_p10)  ;;  %v199_v24 = vld [vmem:[#allocation9 + $0x60] sm:$0xff] (!%p539_p10) }
  0x58   :  { %717 = vmatprep.subr.bf16.mxu0 (!%p539_p10), %v716_v8  ;;  %v732_v23 = vpack.c.bf16 (!%p539_p10), %v198_v22, %v197_v21  ;;  %v200_v25 = vld [vmem:[#allocation9 + $0x68] sm:$0xff] (!%p539_p10)  ;;  %v201_v27 = vld [vmem:[#allocation9 + $0x70] sm:$0xff] (!%p539_p10)  ;;  %v202_v28 = vld [vmem:[#allocation9 + $0x78] sm:$0xff] (!%p539_p10)  ;;  %vm180_vm1 = vcmp.eq.s32.totalorder (!%p539_p10), %v174_v30, %v540_v13 }
  0x59   :  { %v736_v26 = vpack.c.bf16 (!%p539_p10), %v200_v25, %v199_v24  ;;  %v740_v29 = vpack.c.bf16 (!%p539_p10), %v202_v28, %v201_v27  ;;  %v186_v31 = vld [vmem:[#allocation2 + $0x8] sm:$0xff] (!%p539_p10)  ;;  %v185_v32 = vld [vmem:[#allocation2] sm:$0xff] (!%p539_p10) }
  0x5b   :  { %719 = vmatpush3.bf16.msra.mxu0 %v716_v8 }
  0x5c   :  { %721 = vmatprep.subr.bf16.mxu0 %v720_v12 }
  0x5f   :  { %723 = vmatpush3.bf16.msra.mxu0 %v720_v12 }
  0x60   :  { %725 = vmatprep.subr.bf16.mxu0 %v724_v17 }
  0x63   :  { %727 = vmatpush3.bf16.msra.mxu0 %v724_v17 }
  0x64   :  { %729 = vmatprep.subr.bf16.mxu0 %v728_v20 }
  0x67   :  { %731 = vmatpush3.bf16.msra.mxu0 %v728_v20 }
  0x68   :  { %733 = vmatprep.subr.bf16.mxu0 %v732_v23 }
  0x6b   :  { %735 = vmatpush3.bf16.msra.mxu0 %v732_v23 }
  0x6c   :  { %737 = vmatprep.subr.bf16.mxu0 %v736_v26 }
  0x6f   :  { %739 = vmatpush3.bf16.msra.mxu0 %v736_v26 }
  0x70   :  { %741 = vmatprep.subr.bf16.mxu0 %v740_v29 }
  0x73   :  { %743 = vmatpush3.bf16.msra.mxu0 %v740_v29 }
  0x76   :  { %640 = vmatmul.mubr.msk.f32.vlgmr.msra.gmra.mrb[0].mxu0 %vm180_vm1, %v948_v16 }
 0x149   :  { %v641_v33 = vpop.f32.mrb[0].mxu0 }
 0x14a   :  { %v279_v34 = vadd.f32 %v641_v33, %v186_v31  ;;  %v269_v35 = vpop.f32.mrb[1].mxu0 }
 0x14b   :  { %v278_v36 = vadd.f32 %v269_v35, %v185_v32 }
 0x14c   :  { %281 = vst [vmem:[#allocation2 + $0x8] sm:$0xff] %v279_v34 }
 0x14d   :  { %280 = vst [vmem:[#allocation2] sm:$0xff] %v278_v36 }
 0x14e PF:  { %v312_v39 = vld [vmem:[#allocation11] sm:$0xff]  ;;  %v949_v40 = vmov 0   ;;  %v313_v43 = vld [vmem:[#allocation11 + $0x8] sm:$0xff]  ;;  %v314_v44 = vld [vmem:[#allocation11 + $0x10] sm:$0xff]  ;;  %v291_v25 = vlaneseq  ;;  %s950_s0 = smov [#allocation14]  }
 0x14f   :  { %817 = vset.pattern.permute.xlu0 %v949_v40  ;;  %v315_v45 = vld [vmem:[#allocation11 + $0x18] sm:$0xff]  ;;  %v744_v46 = vpack.c.bf16 %v313_v43, %v312_v39  ;;  %v316_v48 = vld [vmem:[#allocation11 + $0x20] sm:$0xff]  ;;  %v317_v49 = vld [vmem:[#allocation11 + $0x28] sm:$0xff]  ;;  %s512_s11 = sshll.u32 %s950_s0, 4  ;;  %s513_s11 = int_to_ptr.vmem [resolvable:$true] %s512_s11 }
 0x150   :  { %v748_v47 = vpack.c.bf16 %v315_v45, %v314_v44  ;;  %v752_v50 = vpack.c.bf16 %v317_v49, %v316_v48  ;;  %v318_v51 = vld [vmem:[#allocation11 + $0x30] sm:$0xff]  ;;  %v319_v52 = vld [vmem:[#allocation11 + $0x38] sm:$0xff]  ;;  %v320_v54 = vld [vmem:[#allocation11 + $0x40] sm:$0xff]  ;;  %v292_v26 = vand.u32 127, %v291_v25  ;;  %p917_p12 = scmp.lt.s32.totalorder %s513_s11, %s513_s11 }
 0x151   :  { %745 = vmatprep.subr.bf16.mxu0 %v744_v46  ;;  %v756_v53 = vpack.c.bf16 %v319_v52, %v318_v51  ;;  %v321_v55 = vld [vmem:[#allocation11 + $0x48] sm:$0xff]  ;;  %v322_v59 = vld [vmem:[#allocation11 + $0x50] sm:$0xff]  ;;  %v323_v60 = vld [vmem:[#allocation11 + $0x58] sm:$0xff] }
 0x152   :  { %747 = vmatpush3.bf16.msra.mxu0 %v744_v46  ;;  %v760_v57 = vpack.c.bf16 %v321_v55, %v320_v54  ;;  %v764_v61 = vpack.c.bf16 %v323_v60, %v322_v59  ;;  %v324_v62 = vld [vmem:[#allocation11 + $0x60] sm:$0xff]  ;;  %v325_v63 = vld [vmem:[#allocation11 + $0x68] sm:$0xff]  ;;  %v409_v2 = vld [vmem:[#allocation12 + $0x10] sm:$0xff]  ;;  %vm293_vm2 = vcmp.ge.s32.totalorder %v292_v26, 1  ;;  %vm294_vm3 = vcmp.le.s32.totalorder %v292_v26, 8 }
 0x153   :  { %v1101_v38 = vld [vmem:[#allocation2 + $0x8] sm:$0xff]  ;;  %749 = vmatprep.subr.bf16.mxu0 %v748_v47  ;;  %v407_v0 = vld [vmem:[#allocation12] sm:$0xff]  ;;  %v768_v3 = vpack.c.bf16 %v325_v63, %v324_v62  ;;  %v326_v4 = vld [vmem:[#allocation11 + $0x70] sm:$0xff] }
 0x154   :  { %v1099_v37 = vld [vmem:[#allocation2] sm:$0xff]  ;;  %v288_v42 = vmax.f32 %v1101_v38, 1.0  ;;  %v408_v1 = vld [vmem:[#allocation12 + $0x8] sm:$0xff]  ;;  %v410_v6 = vld [vmem:[#allocation12 + $0x18] sm:$0xff] }
 0x155   :  { %v287_v41 = vmax.f32 %v1099_v37, 1.0  ;;  %v776_v5 = vpack.c.bf16 %v408_v1, %v407_v0  ;;  %v327_v7 = vld [vmem:[#allocation11 + $0x78] sm:$0xff]  ;;  %v780_v8 = vpack.c.bf16 %v410_v6, %v409_v2  ;;  %v411_v9 = vld [vmem:[#allocation12 + $0x20] sm:$0xff]  ;;  %v412_v10 = vld [vmem:[#allocation12 + $0x28] sm:$0xff] }
 0x156   :  { %751 = vmatpush3.bf16.msra.mxu0 %v748_v47  ;;  %v772_v11 = vpack.c.bf16 %v327_v7, %v326_v4  ;;  %v784_v12 = vpack.c.bf16 %v412_v10, %v411_v9  ;;  %v413_v13 = vld [vmem:[#allocation12 + $0x30] sm:$0xff]  ;;  %v414_v14 = vld [vmem:[#allocation12 + $0x38] sm:$0xff]  ;;  %v415_v16 = vld [vmem:[#allocation12 + $0x40] sm:$0xff] }
 0x157   :  { %818 = vrcp.f32 %v287_v41  ;;  %753 = vmatprep.subr.bf16.mxu0 %v752_v50  ;;  %777 = vmatprep.subr.bf16.mxu1 %v776_v5  ;;  %v788_v15 = vpack.c.bf16 %v414_v14, %v413_v13  ;;  %v416_v17 = vld [vmem:[#allocation12 + $0x48] sm:$0xff]  ;;  %v417_v19 = vld [vmem:[#allocation12 + $0x50] sm:$0xff]  ;;  %v418_v20 = vld [vmem:[#allocation12 + $0x58] sm:$0xff] }
 0x158   :  { %820 = vrcp.f32 %v288_v42  ;;  %779 = vmatpush3.bf16.msra.mxu1 %v776_v5  ;;  %v792_v18 = vpack.c.bf16 %v416_v17, %v415_v16  ;;  %v796_v21 = vpack.c.bf16 %v418_v20, %v417_v19  ;;  %v419_v22 = vld [vmem:[#allocation12 + $0x60] sm:$0xff]  ;;  %v420_v23 = vld [vmem:[#allocation12 + $0x68] sm:$0xff]  ;;  %vm295_vm4 = vmand %vm293_vm2, %vm294_vm3 }
 0x159   :  { %781 = vmatprep.subr.bf16.mxu1 %v780_v8  ;;  %v800_v24 = vpack.c.bf16 %v420_v23, %v419_v22  ;;  %v421_v33 = vld [vmem:[#allocation12 + $0x70] sm:$0xff]  ;;  %v422_v34 = vld [vmem:[#allocation12 + $0x78] sm:$0xff]  ;;  %v329_v36 = vld [vmem:[%s1136_s5 + $0x8] sm:$0xff] }
 0x15a   :  { %755 = vmatpush3.bf16.msra.mxu0 %v752_v50  ;;  %v804_v35 = vpack.c.bf16 %v422_v34, %v421_v33  ;;  %v328_v39 = vld [vmem:[%s1136_s5] sm:$0xff]  ;;  %s912_s5 = scalar_lea.vmem %s513_s11, 256 }
 0x15b   :  { %757 = vmatprep.subr.bf16.mxu0 %v756_v53  ;;  %v545_v44 = vld [vmem:[%s1139_s8] ss:$0 sm:$0xff]  ;;  %p913_p11 = scmp.ne.s32.totalorder %s513_s11, %s912_s5  ;;  %p918_p13 = scmp.lt.s32.totalorder %s912_s5, %s912_s5 }
 0x15c   :  { %783 = vmatpush3.bf16.msra.mxu1 %v780_v8 }
 0x15d   :  { %785 = vmatprep.subr.bf16.mxu1 %v784_v12  ;;  %p919_p0 = por %p918_p13, %p917_p12 }
 0x15e   :  { %759 = vmatpush3.bf16.msra.mxu0 %v756_v53 }
 0x15f   :  { %761 = vmatprep.subr.bf16.mxu0 %v760_v57  ;;  %p920_p1 = pnand %p919_p0, %p913_p11 }
 0x160   :  { %787 = vmatpush3.bf16.msra.mxu1 %v784_v12 }
 0x161   :  { %v819_v56 = vpop.eup %818  ;;  %789 = vmatprep.subr.bf16.mxu1 %v788_v15 }
 0x162   :  { %300 = vperm.xlu0 %817, %v819_v56   ;;  %v821_v58 = vpop.eup %820  ;;  %763 = vmatpush3.bf16.msra.mxu0 %v760_v57 }
 0x163   :  { %765 = vmatprep.subr.bf16.mxu0 %v764_v61 }
 0x164   :  { %791 = vmatpush3.bf16.msra.mxu1 %v788_v15 }
 0x165   :  { %793 = vmatprep.subr.bf16.mxu1 %v792_v18 }
 0x166   :  { %305 = vperm.xlu0 %817, %v821_v58   ;;  %767 = vmatpush3.bf16.msra.mxu0 %v764_v61 }
 0x167   :  { %769 = vmatprep.subr.bf16.mxu0 %v768_v3 }
 0x168   :  { %795 = vmatpush3.bf16.msra.mxu1 %v792_v18 }
 0x169   :  { %797 = vmatprep.subr.bf16.mxu1 %v796_v21 }
 0x16a   :  { %771 = vmatpush3.bf16.msra.mxu0 %v768_v3 }
 0x16b   :  { %773 = vmatprep.subr.bf16.mxu0 %v772_v11 }
 0x16c   :  { %799 = vmatpush3.bf16.msra.mxu1 %v796_v21 }
 0x16d   :  { %801 = vmatprep.subr.bf16.mxu1 %v800_v24 }
 0x16e   :  { %775 = vmatpush3.bf16.msra.mxu0 %v772_v11 }
 0x170   :  { %803 = vmatpush3.bf16.msra.mxu1 %v800_v24 }
 0x171   :  { %805 = vmatprep.subr.bf16.mxu1 %v804_v35 }
 0x174   :  { %807 = vmatpush3.bf16.msra.mxu1 %v804_v35 }
 0x1e1   :  { %v301_v27 = vpop.permute.xlu0 %300 }
 0x1e2   :  { %v308_v28 = vsel %vm295_vm4, %v301_v27, 1.0 }
 0x1e3   :  { %v310_v29 = vmul.f32 %v308_v28, %v1099_v37 }
 0x1e5   :  { %674 = vmatprep.mubr.f32.mxu0 %v310_v29  ;;  %v306_v30 = vpop.permute.xlu0 %305 }
 0x1e6   :  { %v309_v31 = vsel %vm295_vm4, %v306_v30, 1.0 }
 0x1e7   :  { %v311_v32 = vmul.f32 %v309_v31, %v1101_v38 }
 0x1e9   :  { %675 = vmatmul.mubr.f32.vlgmr.msra.gmra.mrb[0].mxu0 %v311_v32 }
 0x2bc   :  { %v676_v37 = vpop.f32.mrb[0].mxu0 }
 0x2bd   :  { %v402_v40 = vadd.f32 %v676_v37, %v329_v36  ;;  %v396_v41 = vpop.f32.mrb[1].mxu0 }
 0x2be   :  { %v397_v42 = vadd.f32 %v396_v41, %v328_v39 }
 0x2bf   :  { %v406_v38 = vmax.f32 %v402_v40, 0.0 }
 0x2c0   :  { %v405_v43 = vmax.f32 %v397_v42, 0.0 }
 0x2c2   :  { %709 = vmatprep.mubr.f32.mxu1 %v405_v43 }
 0x2c3   :  { %710 = vmatmul.mubr.f32.vlgmr.msra.gmra.mrb[0].mxu1 %v406_v38 }
 0x396   :  { %v711_v45 = vpop.f32.mrb[0].mxu1 }
 0x397   :  { %v502_v46 = vadd.f32 %v711_v45, %v545_v44  ;;  %v496_v47 = vpop.f32.mrb[1].mxu1 }
 0x398   :  { %v497_v48 = vadd.f32 %v545_v44, %v496_v47 }
 0x399   :  { %506 = vst [vmem:[#allocation14 + $0x8] sm:$0xff] %v502_v46 }
 0x39a   :  { %505 = vst [vmem:[#allocation14] sm:$0xff] %v497_v48 }
 0x39b   :  { %923 = shalt.err (!%p920_p1)
}
 0x39c   :  { %s924_s8 = scalar_lea.hbm %s1140_s9, 256 }
 0x39d   :  { %p925_p2 = scmp.ne.s32.totalorder %s1140_s9, %s924_s8  ;;  %p928_p3 = scmp.lt.u32.totalorder %s924_s8, %s1140_s9 }
 0x39f   :  { %p930_p4 = pnand %p928_p3, %p925_p2 }
 0x3a1   :  { %933 = shalt.err (!%p930_p4)
}
 0x3a2   :  { %518 = dma.vmem_to_hbm [thread:$0]  %s513_s11, 256, %s1140_s9, [#allocation8], %s946_s12, %s946_s12, %s947_s3  }
 0x3a3   :  { %940 = dma.done.wait [#allocation8], 256  }
 0x3a4   :  { %941 = vsyncadd [#allocation8], 4294967040 }
 0x3a5   :  { %522 = vsyncpa [#allocation7], 1 }
 0x3a6   :  { %523 = vsyncpa [#allocation10], 1 }
 0x3a7   :  { %524 = vsyncpa [#allocation13], 1 }
 0x3a8   :  { %525 = vsyncpa [#allocation8], 1 }

</bundles_post_ra>
